<compile_context>
chip_gen: v7x
topology: tpu7x:2x2x1
jax: 0.10.0
libtpu: 0.0.40
codegen_flags: <defaults>
</compile_context>

<pallas_src>
from functools import partial

import jax
import jax.numpy as jnp
from jax.experimental import pallas as pl
from jax.experimental.pallas import tpu as pltpu


def _round_up(x, m):
    return (x + m - 1) // m * m


# ---------------------------------------------------------------------------
# Kernel: full encoder forward for one batch tile.
# ---------------------------------------------------------------------------
def encoder_kernel(row_offsets, row_sizes, num_hidden, latent_size,
                   out_width, compute_dtype, x_ref, w_ref, b_ref, out_ref):
    h = x_ref[...]
    if h.dtype != compute_dtype:
        h = h.astype(compute_dtype)          # cast once per tile, not per layer

    for l in range(num_hidden + 1):          # hidden layers + fused mean/std head
        off, rows = row_offsets[l], row_sizes[l]
        w = w_ref[off:off + rows, :]         # static slice of resident params
        if w.dtype != compute_dtype:
            w = w.astype(compute_dtype)
        acc = jnp.dot(h, w, preferred_element_type=jnp.float32)
        acc = acc + b_ref[l:l + 1, :]        # bias add in f32

        if l < num_hidden:
            h = jnp.maximum(acc, 0.0)        # ReLU in f32 (v5e-friendly)
            if compute_dtype != jnp.float32:
                h = h.astype(compute_dtype)
        else:
            # Fused head: cols [0, latent) = mean (no ReLU),
            #             cols [latent, 2*latent) = relu(std); padding stays 0.
            col = jax.lax.broadcasted_iota(jnp.int32, acc.shape, 1)
            acc = jnp.where(col >= latent_size, jnp.maximum(acc, 0.0), acc)
            # out_width is a multiple of 128 -> aligned slice, unmasked stores.
            out_ref[...] = acc[:, :out_width].astype(out_ref.dtype)


# ---------------------------------------------------------------------------
# Parameter construction / packing (wrapper side)
# ---------------------------------------------------------------------------
def init_encoder_params(key, channel_sizes, latent_size, dtype=jnp.float32):
    """PyTorch-style Linear init; weights already transposed to [in, out]."""
    num_hidden = len(channel_sizes) - 1
    layer_dims = [(channel_sizes[c], channel_sizes[c + 1])
                  for c in range(num_hidden)]
    layer_dims += [(channel_sizes[-1], latent_size),   # mean head
                   (channel_sizes[-1], latent_size)]   # std head
    params = []
    for fan_in, fan_out in layer_dims:
        key, kw, kb = jax.random.split(key, 3)
        bound = 1.0 / float(fan_in) ** 0.5
        w = jax.random.uniform(kw, (fan_in, fan_out), dtype, -bound, bound)
        b = jax.random.uniform(kb, (fan_out,), dtype, -bound, bound)
        params.append((w, b))
    return params


def pack_encoder_params(params, channel_sizes, latent_size,
                        param_dtype=jnp.float32):
    """Pack all layer params into two flat VMEM-friendly buffers.

    mean/std heads are fused into one [c_last, 2*latent] weight. Every in/out
    dim is zero-padded to a common lane width P (multiple of 128); padded
    activations stay exactly zero so results are unchanged.
    """
    num_hidden = len(channel_sizes) - 1
    latent2 = 2 * latent_size
    d0p = _round_up(channel_sizes[0], 8)
    P = _round_up(max(list(channel_sizes[1:]) + [latent2]), 128)

    layers = list(params[:num_hidden])
    (wm, bm), (ws, bs) = params[num_hidden], params[num_hidden + 1]
    layers.append((jnp.concatenate([wm, ws], axis=1),
                   jnp.concatenate([bm, bs], axis=0)))

    row_sizes = [d0p] + [P] * num_hidden
    w_blocks, b_rows = [], []
    for (w, b), rows in zip(layers, row_sizes):
        fan_in, fan_out = w.shape
        w_blocks.append(jnp.pad(w, ((0, rows - fan_in), (0, P - fan_out))))
        b_rows.append(jnp.pad(b, (0, P - fan_out)))
    w_pack = jnp.concatenate(w_blocks, axis=0).astype(param_dtype)
    b_pack = jnp.stack(b_rows, axis=0).astype(jnp.float32)   # biases stay f32

    row_offsets = [0]
    for r in row_sizes[:-1]:
        row_offsets.append(row_offsets[-1] + r)

    return dict(w_pack=w_pack, b_pack=b_pack,
                row_offsets=tuple(row_offsets), row_sizes=tuple(row_sizes),
                d0p=d0p, pad_width=P)


# ---------------------------------------------------------------------------
# Forward wrapper
# ---------------------------------------------------------------------------
def encoder_forward(x, packed, latent_size, *, block_batch=256,
                    compute_dtype=jnp.float32):
    w_pack = packed["w_pack"]
    b_pack = packed["b_pack"]
    row_offsets = packed["row_offsets"]
    row_sizes = packed["row_sizes"]
    d0p = packed["d0p"]
    P = packed["pad_width"]
    num_hidden = len(row_sizes) - 1
    latent2 = 2 * latent_size
    out_width = _round_up(latent2, 128)      # lane-dense output slab width
    assert out_width <= P

    batch, in_features = x.shape
    out_dtype = x.dtype

    # Batch tile: multiple of 8 (f32 sublane) unless the whole batch is tiny.
    if batch <= 8:
        tb = max(batch, 1)
    else:
        tb = max(8, (min(block_batch, batch) // 8) * 8)
    batch_pad = _round_up(batch, tb)

    # Pad features to d0p and batch to a multiple of the tile in one shot.
    x = jnp.pad(x, ((0, batch_pad - batch), (0, d0p - in_features)))

    grid = (batch_pad // tb,)

    kernel = partial(encoder_kernel, row_offsets, row_sizes, num_hidden,
                     latent_size, out_width, compute_dtype)

    packed_out = pl.pallas_call(
        kernel,
        grid=grid,
        in_specs=[
            pl.BlockSpec((tb, d0p), lambda i: (i, 0)),      # x batch tile
            pl.BlockSpec(w_pack.shape, lambda i: (0, 0)),   # resident weights
            pl.BlockSpec(b_pack.shape, lambda i: (0, 0)),   # resident biases
        ],
        out_specs=pl.BlockSpec((tb, out_width), lambda i: (i, 0)),
        out_shape=jax.ShapeDtypeStruct((batch_pad, out_width), out_dtype),
        compiler_params=pltpu.CompilerParams(
            dimension_semantics=("parallel",)),
    )(x, w_pack, b_pack)

    mean = packed_out[:batch, :latent_size]
    std = packed_out[:batch, latent_size:latent2]
    return mean, std


def encoder_reference(x, params, channel_sizes):
    """Pure-JAX reference mirroring the PyTorch forward."""
    num_hidden = len(channel_sizes) - 1
    h = x.astype(jnp.float32)
    for l in range(num_hidden):
        w, b = params[l]
        h = jax.nn.relu(h @ w + b)
    wm, bm = params[num_hidden]
    ws, bs = params[num_hidden + 1]
    return h @ wm + bm, jax.nn.relu(h @ ws + bs)


if __name__ == "__main__":
    # Small, deterministic demo shapes (input features -> hidden dims).
    channel_sizes = [8, 32, 16]
    latent_size = 4
    batch = 16                 # two batch tiles of 8 -> exercises the grid

    key = jax.random.PRNGKey(0)
    key, kx, kp = jax.random.split(key, 3)
    x = jax.random.normal(kx, (batch, channel_sizes[0]), jnp.float32)
    params = init_encoder_params(kp, channel_sizes, latent_size)

    mean_ref, std_ref = encoder_reference(x, params, channel_sizes)

    # --- float32 path -------------------------------------------------------
    packed_f32 = pack_encoder_params(params, channel_sizes, latent_size,
                                     param_dtype=jnp.float32)
    mean, std = encoder_forward(x, packed_f32, latent_size,
                                block_batch=8, compute_dtype=jnp.float32)
    jax.block_until_ready((mean, std))
    assert mean.shape == (batch, latent_size)
    assert std.shape == (batch, latent_size)
    assert jnp.allclose(mean, mean_ref, atol=1e-4, rtol=1e-4)
    assert jnp.allclose(std, std_ref, atol=1e-4, rtol=1e-4)
    assert jnp.all(std >= 0.0)

    # --- bf16-operand path (MXU-friendly on v6e/v7x; f32 accumulation) ------
    packed_bf16 = pack_encoder_params(params, channel_sizes, latent_size,
                                      param_dtype=jnp.bfloat16)
    mean_b, std_b = encoder_forward(x, packed_bf16, latent_size,
                                    block_batch=8,
                                    compute_dtype=jnp.bfloat16)
    jax.block_until_ready((mean_b, std_b))
    assert jnp.allclose(mean_b, mean_ref, atol=1e-1, rtol=1e-1)
    assert jnp.allclose(std_b, std_ref, atol=1e-1, rtol=1e-1)
    assert jnp.all(std_b >= 0.0)

    print("KERNEL_OK")
</pallas_src>

<mosaic_0001>
module attributes {stable_mosaic.version = 11 : i64} {
  func.func @encoder_kernel(%arg0: i32, %arg1: memref<8x8xf32, #tpu.memory_space<vmem>>, %arg2: memref<264x128xf32, #tpu.memory_space<vmem>>, %arg3: memref<3x128xf32, #tpu.memory_space<vmem>>, %arg4: memref<8x128xf32, #tpu.memory_space<vmem>>) attributes {dimension_semantics = [#tpu.dimension_semantics<parallel>], iteration_bounds = array<i64: 2>, scalar_prefetch = 0 : i64, scratch_operands = 0 : i64, tpu.core_type = #tpu.core_type<tc>, window_params = [{transform_indices = @transform_0, window_bounds = array<i64: 8, 8>}, {pipeline_mode = #tpu.pipeline_mode<synchronous>, transform_indices = @transform_1, window_bounds = array<i64: 264, 128>}, {pipeline_mode = #tpu.pipeline_mode<synchronous>, transform_indices = @transform_2, window_bounds = array<i64: 3, 128>}, {transform_indices = @transform_3, window_bounds = array<i64: 8, 128>}]} {
    %c0 = arith.constant 0 : index
    %c0_0 = arith.constant 0 : index
    %0 = vector.load %arg1[%c0, %c0_0] : memref<8x8xf32, #tpu.memory_space<vmem>>, vector<8x8xf32>
    %c0_1 = arith.constant 0 : index
    %c0_2 = arith.constant 0 : index
    %1 = vector.load %arg2[%c0_1, %c0_2] : memref<264x128xf32, #tpu.memory_space<vmem>>, vector<8x128xf32>
    %cst = arith.constant dense<0.000000e+00> : vector<8x128xf32>
    %2 = tpu.matmul %0, %1, %cst {dimension_numbers = #tpu.dot_dimension_numbers<[1], [0], [0], [1], [0, 0, 1, 1], [], []>} : vector<8x8xf32>, vector<8x128xf32>, vector<8x128xf32> -> vector<8x128xf32>
    %c0_3 = arith.constant 0 : index
    %c0_4 = arith.constant 0 : index
    %3 = vector.load %arg3[%c0_3, %c0_4] : memref<3x128xf32, #tpu.memory_space<vmem>>, vector<1x128xf32>
    %4 = vector.broadcast %3 : vector<1x128xf32> to vector<8x128xf32>
    %5 = arith.addf %2, %4 : vector<8x128xf32>
    %cst_5 = arith.constant 0.000000e+00 : f32
    %6 = vector.broadcast %cst_5 : f32 to vector<8x128xf32>
    %7 = arith.maximumf %5, %6 : vector<8x128xf32>
    %c8 = arith.constant 8 : index
    %c0_6 = arith.constant 0 : index
    %8 = vector.load %arg2[%c8, %c0_6] : memref<264x128xf32, #tpu.memory_space<vmem>>, vector<128x128xf32>
    %cst_7 = arith.constant dense<0.000000e+00> : vector<8x128xf32>
    %9 = tpu.matmul %7, %8, %cst_7 {dimension_numbers = #tpu.dot_dimension_numbers<[1], [0], [0], [1], [0, 0, 1, 1], [], []>} : vector<8x128xf32>, vector<128x128xf32>, vector<8x128xf32> -> vector<8x128xf32>
    %c1 = arith.constant 1 : index
    %c0_8 = arith.constant 0 : index
    %10 = vector.load %arg3[%c1, %c0_8] : memref<3x128xf32, #tpu.memory_space<vmem>>, vector<1x128xf32>
    %11 = vector.broadcast %10 : vector<1x128xf32> to vector<8x128xf32>
    %12 = arith.addf %9, %11 : vector<8x128xf32>
    %cst_9 = arith.constant 0.000000e+00 : f32
    %13 = vector.broadcast %cst_9 : f32 to vector<8x128xf32>
    %14 = arith.maximumf %12, %13 : vector<8x128xf32>
    %c136 = arith.constant 136 : index
    %c0_10 = arith.constant 0 : index
    %15 = vector.load %arg2[%c136, %c0_10] : memref<264x128xf32, #tpu.memory_space<vmem>>, vector<128x128xf32>
    %cst_11 = arith.constant dense<0.000000e+00> : vector<8x128xf32>
    %16 = tpu.matmul %14, %15, %cst_11 {dimension_numbers = #tpu.dot_dimension_numbers<[1], [0], [0], [1], [0, 0, 1, 1], [], []>} : vector<8x128xf32>, vector<128x128xf32>, vector<8x128xf32> -> vector<8x128xf32>
    %c2 = arith.constant 2 : index
    %c0_12 = arith.constant 0 : index
    %17 = vector.load %arg3[%c2, %c0_12] : memref<3x128xf32, #tpu.memory_space<vmem>>, vector<1x128xf32>
    %18 = vector.broadcast %17 : vector<1x128xf32> to vector<8x128xf32>
    %19 = arith.addf %16, %18 : vector<8x128xf32>
    %20 = tpu.iota {dimensions = array<i32: 1>} : vector<8x128xi32>
    %c4_i32 = arith.constant 4 : i32
    %21 = vector.broadcast %c4_i32 : i32 to vector<8x128xi32>
    %22 = arith.cmpi sge, %20, %21 : vector<8x128xi32>
    %cst_13 = arith.constant 0.000000e+00 : f32
    %23 = vector.broadcast %cst_13 : f32 to vector<8x128xf32>
    %24 = arith.maximumf %19, %23 : vector<8x128xf32>
    %25 = arith.select %22, %24, %19 : vector<8x128xi1>, vector<8x128xf32>
    %c0_14 = arith.constant 0 : index
    %c0_15 = arith.constant 0 : index
    %26 = vector.load %arg4[%c0_14, %c0_15] : memref<8x128xf32, #tpu.memory_space<vmem>>, vector<8x128xf32>
    tpu.vector_store %arg4[%c0_14, %c0_15], %25 {strides = array<i32>} : memref<8x128xf32, #tpu.memory_space<vmem>>, vector<8x128xf32>,
    return
  }
  func.func @transform_0(%arg0: i32) -> (i32, i32) {
    %c0_i32 = arith.constant 0 : i32
    %c0_i32_0 = arith.constant 0 : i32
    return %arg0, %c0_i32 : i32, i32
  }
  func.func @transform_1(%arg0: i32) -> (i32, i32) {
    %c0_i32 = arith.constant 0 : i32
    %c0_i32_0 = arith.constant 0 : i32
    %c0_i32_1 = arith.constant 0 : i32
    return %c0_i32, %c0_i32_0 : i32, i32
  }
  func.func @transform_2(%arg0: i32) -> (i32, i32) {
    %c0_i32 = arith.constant 0 : i32
    %c0_i32_0 = arith.constant 0 : i32
    %c0_i32_1 = arith.constant 0 : i32
    return %c0_i32, %c0_i32_0 : i32, i32
  }
  func.func @transform_3(%arg0: i32) -> (i32, i32) {
    %c0_i32 = arith.constant 0 : i32
    %c0_i32_0 = arith.constant 0 : i32
    return %arg0, %c0_i32 : i32, i32
  }
}

</mosaic_0001>

<bundles_post_ra>
// kernel: tpu_custom_call.1
= control target key start
LH: loop header
LB: loop body
LE: loop exit
PB: predicated region body
PF: predicated region fallthrough
CT: control target
= control target key end

     0   :  { %8 = vsyncpa [#allocation3], 0  ;;  %s1053_s0 = inlined_call_operand.vmem [shape: f32[16,8], index: 0, kind: input, shape index: {}]   ;;  %s1054_s1 = inlined_call_operand.hbm [shape: f32[264,128], index: 1, kind: input, shape index: {}]   ;;  %s1055_s2 = inlined_call_operand.vmem [shape: f32[3,128], index: 2, kind: input, shape index: {}]   ;;  %s1056_s3 = inlined_call_operand.hbm [shape: f32[16,128], index: 3, kind: output, shape index: {}]  }
   0x1   :  { %9 = vsyncpa [#allocation4], 0 }
   0x2   :  { %11 = vsyncpa [#allocation4 + $0x1], 0  ;;  %s890_s12 = smov 0   ;;  %s892_s13 = smov 0  }
   0x3   :  { %s894_s14 = smov 0   ;;  %s896_s15 = smov 0  }
   0x4 LB: > { %s911_s16 = sadd.s32 4294967295, %s861_s15   ;;  %s537_s17 = sadd.s32 4294967294, %s861_s15   ;;  %s861_s15 = sphi %s896_s15, %s1072_s15   ;;  %s857_s14 = sphi %s894_s14, %s1071_s14   ;;  %s853_s13 = sphi %s892_s13, %s1070_s13   ;;  %s849_s12 = sphi %s890_s12, %s1069_s12  }
   0x5   : > { %s915_s18 = sadd.s32 1, %s861_s15   ;;  %s92_s19 = sadd.s32 1, %s857_s14 }
   0x6   : > { %s89_s20 = ssub.s32 %s861_s15, %s915_s18  ;;  %p102_p0 = scmp.ne.s32.totalorder %s857_s14, %s853_s13 }
   0x7   : > { %p90_p1 = scmp.eq.s32.totalorder %s89_s20, 0  ;;  %p103_p2 = scmp.eq.s32.totalorder %s911_s16, 1 }
   0x8   : > { %p108_p3 = scmp.ne.s32.totalorder %s853_s13, %s849_s12  ;;  %p109_p4 = scmp.eq.s32.totalorder %s537_s17, 1 }
   0x9   : > { %s926_s21 = scalar_select %p90_p1, %s857_s14, %s92_s19  }
   0xa   : > { %p928_p5 = por %p103_p2, %p102_p0  ;;  %p932_p6 = por %p109_p4, %p108_p3 }
   0xb   : > { %p538_p7 = scmp.ge.s32.totalorder %s861_s15, 1  ;;  %p116_p8 = scmp.lt.s32.totalorder %s861_s15, 3 }
   0xc   : > { %s1060_s22 = scalar_select %p928_p5, 1, 0 }
   0xd   : > { %s1061_s23 = scalar_select %p932_p6, 1, 0 }
   0xe   : > { %p1057_p9 = scmp.eq.s32.totalorder %s911_s16, 0  ;;  %p939_p10 = pnand %p538_p7, %p116_p8 }
   0xf   : > { %s863_s25 = smov [#allocation2]   ;;  %s767_s30 = scalar_lea.hbm %s1054_s1, 4224 }
  0x10   : > { %s1062_s24 = scalar_select %p939_p10, 1, 0 }
  0x11   : > { %s128_s26 = sshll.u32 %s863_s25, 4  ;;  %p718_p11 = pneg %p939_p10  ;;  %s129_s26 = int_to_ptr.vmem [resolvable:$true] %s128_s26 }
  0x12   : > { %p768_p13 = scmp.ne.s32.totalorder %s1054_s1, %s767_s30  ;;  %p774_p3 = scmp.lt.u32.totalorder %s767_s30, %s1054_s1 }
  0x13   : > { %p947_p12 = pnand %p1057_p9, %p718_p11 }
  0x15   : > { %p769_p0 = pneg %p947_p12 }
  0x17   : > { %p770_p1 = pnand %p769_p0, %p768_p13 }
  0x19   : > { %p771_p2 = pneg %p770_p1 }
  0x1b   : > { %p776_p4 = pnand %p774_p3, %p771_p2 }
  0x1d   : > { %779 = shalt.err (!%p776_p4)
}
  0x1e   : > { %s780_s8 = scalar_lea.vmem %s129_s26, 4224  ;;  %p788_p9 = scmp.lt.s32.totalorder %s129_s26, %s129_s26 }
  0x1f   : > { %p781_p7 = scmp.ne.s32.totalorder %s129_s26, %s780_s8  ;;  %p789_p6 = scmp.lt.s32.totalorder %s780_s8, %s780_s8 }
  0x21   : > { %p783_p8 = pnand %p781_p7, %p769_p0  ;;  %p790_p5 = por %p789_p6, %p788_p9 }
  0x23   : > { %p784_p11 = pneg %p783_p8 }
  0x25   : > { %p791_p10 = pnand %p790_p5, %p784_p11 }
  0x27   : > { %794 = shalt.err (!%p791_p10)
}
  0x28   : > { %s864_s9 = smov 128   ;;  %s865_s10 = smov 8  }
  0x29   : > { %721 = dma.hbm_to_vmem [thread:$0]  (!%p947_p12), %s1054_s1, 4224, %s129_s26, [#allocation3], %s864_s9, %s864_s9, %s865_s10  }
  0x2a   : > { %p1064_p13 = scmp.ne.s32.totalorder %s1062_s24, 0 }
  0x2b   : > { %p1065_p1 = scmp.eq.s32.totalorder (!%p1064_p13), %s911_s16, 0 }
  0x2c   : > { %154 = sbr.rel (%p1064_p13) target bundleno = 722 (0x2d2), region = 32 }
  0x33   : > { %840 = dma.done.wait (%p1065_p1), [#allocation3], 4224   ;;  %p1066_p0 = pmov %p1065_p1 }
  0x34   : > { %p177_p5 = scmp.lt.s32.totalorder %s911_s16, 1  ;;  %v866_v0 = vmov 0.0   ;;  %vm867_vm0 = vmmov 0   ;;  %v868_v1 = vmov 0.0|0.0   ;;  %vm188_vm1 = vcmask 64512   ;;  %v182_v2 = vld [vmem:[#allocation2] sm:$0xff] }
  0x35   : > { %842 = vsyncadd (%p1066_p0), [#allocation3], 4294963072  ;;  %589 = vmatprep.subr.mxu0 %v866_v0  ;;  %591 = vmatprep.mubr.msk.f32.mxu0 %vm867_vm0, %v866_v0  ;;  %v263_v4 = vld [vmem:[#allocation2 + $0x8] sm:$0xff]  ;;  %v264_v5 = vld [vmem:[#allocation2 + $0x10] sm:$0xff]  ;;  %s174_s4 = sand.u32 1, %s853_s13   ;;  %v446_v62 = vlaneseq  ;;  %s550_s8 = sshll.u32 %s911_s16, 7 }
  0x36   : > { %s178_s19 = scalar_select %p177_p5, %s911_s16, 1  ;;  %664 = vmatprep.subr.bf16.mxu1 %v868_v1  ;;  %626 = vmatprep.mubr.msk.f32.mxu1 %vm867_vm0, %v866_v0  ;;  %v265_v6 = vld [vmem:[#allocation2 + $0x18] sm:$0xff]  ;;  %v266_v7 = vld [vmem:[#allocation2 + $0x20] sm:$0xff]  ;;  %v665_v8 = vpack.c.bf16 %v264_v5, %v263_v4  ;;  %v267_v10 = vld [vmem:[#allocation2 + $0x28] sm:$0xff] }
  0x37   : > { %590 = vmatpush3.msra.mxu0 %v182_v2  ;;  %v668_v9 = vpack.c.bf16 %v266_v7, %v265_v6  ;;  %v268_v11 = vld [vmem:[#allocation2 + $0x30] sm:$0xff]  ;;  %v269_v13 = vld [vmem:[#allocation2 + $0x38] sm:$0xff]  ;;  %v270_v14 = vld [vmem:[#allocation2 + $0x40] sm:$0xff]  ;;  %s543_s5 = sshll.u32 %s174_s4, 3  ;;  %p1067_p9 = scmp.ne.s32.totalorder %s1060_s22, 0 }
  0x38   : > { %s544_s20 = sshll.u32 %s178_s19, 3  ;;  %688 = vmatprep.subr.bf16.mxu0 %v868_v1  ;;  %666 = vmatpush3.bf16.msra.mxu1 %v665_v8  ;;  %v671_v12 = vpack.c.bf16 %v268_v11, %v267_v10  ;;  %v674_v15 = vpack.c.bf16 %v270_v14, %v269_v13  ;;  %v271_v16 = vld [vmem:[#allocation2 + $0x48] sm:$0xff]  ;;  %v272_v17 = vld [vmem:[#allocation2 + $0x50] sm:$0xff]  ;;  %v273_v19 = vld [vmem:[#allocation2 + $0x58] sm:$0xff]  ;;  %s176_s9 = scalar_lea.vmem [#allocation5], %s543_s5 }
  0x39   : > { %s180_s26 = scalar_lea.vmem %s1053_s0, %s544_s20  ;;  %667 = vmatprep.subr.bf16.mxu1 %v868_v1  ;;  %v677_v18 = vpack.c.bf16 %v272_v17, %v271_v16  ;;  %v274_v20 = vld [vmem:[#allocation2 + $0x60] sm:$0xff]  ;;  %v275_v22 = vld [vmem:[#allocation2 + $0x68] sm:$0xff]  ;;  %v276_v23 = vld [vmem:[#allocation2 + $0x70] sm:$0xff]  ;;  %s466_s10 = sshll.u32 %s176_s9, 4  ;;  %s1013_s10 = int_to_ptr.vmem [resolvable:$true] %s466_s10 }
  0x3a   : > { %v181_v3 = vld [vmem:[%s180_s26] sm:$0xff]  ;;  %v680_v21 = vpack.c.bf16 %v274_v20, %v273_v19  ;;  %v683_v24 = vpack.c.bf16 %v276_v23, %v275_v22  ;;  %v277_v25 = vld [vmem:[#allocation2 + $0x78] sm:$0xff]  ;;  %v278_v26 = vld [vmem:[#allocation2 + $0x80] sm:$0xff]  ;;  %s1011_s19 = scalar_lea.hbm %s1056_s3, %s550_s8  ;;  %s453_s20 = scalar_lea.sflag [#allocation4], %s174_s4 }
  0x3b   : > { %592 = vmatmul.mubr.msk.f32.vlgmr.msra.gmra.mrb[0].mxu0 %vm188_vm1, %v181_v3  ;;  %v686_v27 = vpack.c.bf16 %v278_v26, %v277_v25  ;;  %v355_v28 = vld [vmem:[#allocation2 + $0x88] sm:$0xff]  ;;  %v356_v29 = vld [vmem:[#allocation2 + $0x90] sm:$0xff]  ;;  %v357_v30 = vld [vmem:[#allocation2 + $0x98] sm:$0xff]  ;;  %s795_s24 = scalar_lea.vmem %s1013_s10, 128  ;;  %s869_s16 = smov [#allocation5]  }
  0x3c   : > { %661 = vmatprep.mubr.msk.f32.mxu0 %vm867_vm0, %v866_v0  ;;  %669 = vmatpush3.bf16.msra.mxu1 %v668_v9  ;;  %v689_v31 = vpack.c.bf16 %v356_v29, %v355_v28  ;;  %v358_v32 = vld [vmem:[#allocation2 + $0xa0] sm:$0xff]  ;;  %v359_v34 = vld [vmem:[#allocation2 + $0xa8] sm:$0xff]  ;;  %v360_v35 = vld [vmem:[#allocation2 + $0xb0] sm:$0xff]  ;;  %v447_v0 = vand.u32 127, %v446_v62  ;;  %p796_p6 = scmp.ne.s32.totalorder %s1013_s10, %s795_s24  ;;  %s799_s25 = sshll.u32 %s869_s16, 4  ;;  %s800_s25 = int_to_ptr.vmem [resolvable:$false] %s799_s25 }
  0x3d   : > { %670 = vmatprep.subr.bf16.mxu1 %v868_v1  ;;  %v692_v33 = vpack.c.bf16 %v358_v32, %v357_v30  ;;  %v695_v36 = vpack.c.bf16 %v360_v35, %v359_v34  ;;  %v361_v37 = vld [vmem:[#allocation2 + $0xb8] sm:$0xff]  ;;  %v362_v38 = vld [vmem:[#allocation2 + $0xc0] sm:$0xff]  ;;  %v363_v40 = vld [vmem:[#allocation2 + $0xc8] sm:$0xff]  ;;  %s801_s26 = scalar_lea.vmem %s800_s25, 256  ;;  %p802_p2 = scmp.lt.s32.totalorder %s1013_s10, %s800_s25 }
  0x3e   : > { %690 = vmatpush3.bf16.msra.mxu0 %v689_v31  ;;  %v698_v39 = vpack.c.bf16 %v362_v38, %v361_v37  ;;  %v364_v41 = vld [vmem:[#allocation2 + $0xd0] sm:$0xff]  ;;  %v365_v43 = vld [vmem:[#allocation2 + $0xd8] sm:$0xff]  ;;  %v366_v44 = vld [vmem:[#allocation2 + $0xe0] sm:$0xff]  ;;  %vm448_vm2 = vcmp.ge.s32.totalorder %v447_v0, 4  ;;  %p797_p10 = pnand %p796_p6, %p1067_p9  ;;  %p803_p3 = scmp.lt.s32.totalorder %s801_s26, %s795_s24 }
  0x3f   : > { %691 = vmatprep.subr.bf16.mxu0 %v868_v1  ;;  %v701_v42 = vpack.c.bf16 %v364_v41, %v363_v40  ;;  %v704_v45 = vpack.c.bf16 %v366_v44, %v365_v43  ;;  %v367_v46 = vld [vmem:[#allocation2 + $0xe8] sm:$0xff]  ;;  %v368_v47 = vld [vmem:[#allocation2 + $0xf0] sm:$0xff]  ;;  %v369_v54 = vld [vmem:[#allocation2 + $0xf8] sm:$0xff] }
  0x40   : > { %672 = vmatpush3.bf16.msra.mxu1 %v671_v12  ;;  %v707_v48 = vpack.c.bf16 %v368_v47, %v367_v46  ;;  %v545_v49 = vld [vmem:[%s1055_s2] ss:$0 sm:$0xff]  ;;  %v370_v55 = vld [vmem:[#allocation2 + $0x100] sm:$0xff]  ;;  %v547_v57 = vld [vmem:[%s1055_s2 + $0x1] ss:$0 sm:$0xff]  ;;  %p798_p12 = pneg %p797_p10  ;;  %p804_p4 = por %p803_p3, %p802_p2 }
  0x41   : > { %673 = vmatprep.subr.bf16.mxu1 %v868_v1  ;;  %v710_v56 = vpack.c.bf16 %v370_v55, %v369_v54  ;;  %v548_v63 = vld [vmem:[%s1055_s2 + $0x2] ss:$0 sm:$0xff] }
  0x42   : > { %693 = vmatpush3.bf16.msra.mxu0 %v692_v33  ;;  %p805_p7 = pnand %p804_p4, %p798_p12 }
  0x43   : > { %694 = vmatprep.subr.bf16.mxu0 %v868_v1 }
  0x44   : > { %675 = vmatpush3.bf16.msra.mxu1 %v674_v15 }
  0x45   : > { %676 = vmatprep.subr.bf16.mxu1 %v868_v1 }
  0x46   : > { %696 = vmatpush3.bf16.msra.mxu0 %v695_v36 }
  0x47   : > { %697 = vmatprep.subr.bf16.mxu0 %v868_v1 }
  0x48   : > { %678 = vmatpush3.bf16.msra.mxu1 %v677_v18 }
  0x49   : > { %679 = vmatprep.subr.bf16.mxu1 %v868_v1 }
  0x4a   : > { %699 = vmatpush3.bf16.msra.mxu0 %v698_v39 }
  0x4b   : > { %700 = vmatprep.subr.bf16.mxu0 %v868_v1 }
  0x4c   : > { %681 = vmatpush3.bf16.msra.mxu1 %v680_v21 }
  0x4d   : > { %682 = vmatprep.subr.bf16.mxu1 %v868_v1 }
  0x4e   : > { %702 = vmatpush3.bf16.msra.mxu0 %v701_v42 }
  0x4f   : > { %703 = vmatprep.subr.bf16.mxu0 %v868_v1 }
  0x50   : > { %684 = vmatpush3.bf16.msra.mxu1 %v683_v24 }
  0x51   : > { %685 = vmatprep.subr.bf16.mxu1 %v868_v1 }
  0x52   : > { %705 = vmatpush3.bf16.msra.mxu0 %v704_v45 }
  0x53   : > { %706 = vmatprep.subr.bf16.mxu0 %v868_v1 }
  0x54   : > { %687 = vmatpush3.bf16.msra.mxu1 %v686_v27 }
  0x56   : > { %708 = vmatpush3.bf16.msra.mxu0 %v707_v48 }
  0x57   : > { %709 = vmatprep.subr.bf16.mxu0 %v868_v1 }
  0x5a   : > { %711 = vmatpush3.bf16.msra.mxu0 %v710_v56 }
 0x10e   : > { %v258_v50 = vpop.f32.mrb[0].mxu0 }
 0x10f   : > { %v259_v51 = vadd.f32 %v545_v49, %v258_v50  ;;  %v593_v52 = vpop.f32.mrb[1].mxu0 }
 0x111   : > { %v262_v53 = vmax.f32 %v259_v51, 0.0 }
 0x113   : > { %627 = vmatmul.mubr.f32.vlgmr.msra.gmra.mrb[0].mxu1 %v262_v53 }
 0x1e6   : > { %v350_v58 = vpop.f32.mrb[0].mxu1 }
 0x1e7   : > { %v351_v59 = vadd.f32 %v547_v57, %v350_v58  ;;  %v628_v60 = vpop.f32.mrb[1].mxu1 }
 0x1e9   : > { %v354_v61 = vmax.f32 %v351_v59, 0.0 }
 0x1eb   : > { %662 = vmatmul.mubr.f32.vlgmr.msra.gmra.mrb[2].mxu0 %v354_v61 }
 0x2be   : > { %v442_v1 = vpop.f32.mrb[2].mxu0 }
 0x2bf   : > { %v443_v2 = vadd.f32 %v548_v63, %v442_v1  ;;  %v663_v3 = vpop.f32.mrb[3].mxu0 }
 0x2c1   : > { %v449_v4 = vmax.f32 %v443_v2, 0.0 }
 0x2c3   : > { %v450_v5 = vsel %vm448_vm2, %v449_v4, %v443_v2 }
 0x2c4   : > { %451 = vst [vmem:[%s176_s9] sm:$0xff] %v450_v5 }
 0x2c5   : > { %808 = shalt.err (!%p805_p7)
}
 0x2c6   : > { %s809_s27 = scalar_lea.hbm %s1011_s19, 128  ;;  %s813_s30 = scalar_lea.hbm %s1056_s3, 256 }
 0x2c7   : > { %p810_p8 = scmp.ne.s32.totalorder %s1011_s19, %s809_s27  ;;  %p814_p1 = scmp.lt.u32.totalorder %s1011_s19, %s1056_s3 }
 0x2c8   : > { %p815_p0 = scmp.lt.u32.totalorder %s813_s30, %s809_s27  ;;  %p817_p6 = scmp.lt.u32.totalorder %s809_s27, %s1011_s19 }
 0x2c9   : > { %p811_p11 = pnand %p810_p8, %p1067_p9 }
 0x2ca   : > { %p816_p5 = por %p815_p0, %p814_p1 }
 0x2cb   : > { %p812_p13 = pneg %p811_p11 }
 0x2cc   : > { %p818_p10 = por %p817_p6, %p816_p5 }
 0x2ce   : > { %p819_p12 = pnand %p818_p10, %p812_p13 }
 0x2d0   : > { %822 = shalt.err (!%p819_p12)
}
 0x2d1   : > { %716 = dma.vmem_to_hbm [thread:$0]  (%p1067_p9), %s1013_s10, 128, %s1011_s19, %s453_s20  }
 0x2d2 PF: > { %p728_p2 = scmp.ge.s32.totalorder %s861_s15, 2  ;;  %s478_s6 = sand.u32 1, %s849_s12  }
 0x2d3   : > { %p1068_p3 = scmp.ne.s32.totalorder %s1061_s23, 0  ;;  %s479_s7 = scalar_lea.sflag [#allocation4], %s478_s6 }
 0x2d5   : > { %p723_p4 = pnand %p728_p2, %p1068_p3 }
 0x2d7   : > { %844 = dma.done.wait (!%p723_p4), %s479_s7, 128  }
 0x2d8   : > { %846 = vsyncadd (!%p723_p4), %s479_s7, 4294967168  ;;  %p14_p7 = scmp.ge.s32.totalorder %s915_s18, 4   ;;  %s1069_s12 = smov %s853_s13 }
 0x2d9   : > { %s1070_s13 = smov %s857_s14  ;;  %s1071_s14 = smov %s926_s21 }
 0x2da   : > { %s1072_s15 = smov %s915_s18  ;;  %16 = sbr.rel (!%p14_p7) target bundleno = 4 (0x4), region = 72 }
 0x2e1   :  { %484 = vsyncpa [#allocation3], 1 }
 0x2e2   :  { %486 = vsyncpa [#allocation3 + $0x1], 1 }
 0x2e3   :  { %487 = vsyncpa [#allocation4], 1 }
 0x2e4   :  { %489 = vsyncpa [#allocation4 + $0x1], 1 }

</bundles_post_ra>
